<compile_context>
chip_gen: v5e
topology: v5e:2x2
jax: 0.10.0
libtpu: 0.0.40
codegen_flags: <defaults>
</compile_context>

<pallas_src>
from functools import partial

import jax
import jax.numpy as jnp
import numpy as np
from jax.experimental import pallas as pl
from jax.experimental.pallas import tpu as pltpu

EPS = 1e-5  # PyTorch BatchNorm1d default eps


def _round_up(x, m):
    return ((x + m - 1) // m) * m


# ---------------------------------------------------------------------------
# pass 1: conv1 (single deep im2col MXU matmul) + per-tile partial BN stats
# ---------------------------------------------------------------------------
def _conv_stats_kernel(K, left, L, mxu_dtype,
                       x_ref, posp_ref, w_ref, b_ref,
                       y_ref, sum_ref, sq_ref):
    C, TW = x_ref.shape
    x = x_ref[...]
    posp = posp_ref[...]                      # (1, TW) within-sample padded position

    # (K*C, TW) im2col patch built in-register: row-block k reads x[:, col-left+k].
    # The lane rotation wraps at tile edges, but (tiles being sample-aligned) the
    # wrapped lanes only ever land on pad/garbage columns, which are masked below.
    blocks = []
    for k in range(K):
        s = (left - k) % TW
        blocks.append(x if s == 0 else pltpu.roll(x, shift=s, axis=1))
    patch = jnp.concatenate(blocks, axis=0).astype(mxu_dtype)

    y = jnp.dot(w_ref[...], patch, preferred_element_type=jnp.float32) + b_ref[...]
    y_ref[...] = y

    # masked per-tile partial stats for training-mode BatchNorm (E[y], E[y^2])
    valid = jnp.logical_and(posp >= left, posp < left + L)
    ym = jnp.where(valid, y, 0.0)
    sum_ref[...] = jnp.sum(ym, axis=1, keepdims=True)[None]
    sq_ref[...] = jnp.sum(ym * y, axis=1, keepdims=True)[None]


# ---------------------------------------------------------------------------
# pass 2: bn1 + relu, in-register reflect rebuild, conv2 + per-tile stats
# ---------------------------------------------------------------------------
def _bn_relu_conv_stats_kernel(K, left, L, mxu_dtype,
                               y_ref, posp_ref, scale_ref, shift_ref, w_ref, b_ref,
                               z_ref, sum_ref, sq_ref):
    C, TW = y_ref.shape
    right = (K - 1) - left
    posp = posp_ref[...]

    # bn1 folded into per-channel scale/shift (computed wrapper-side) + relu
    h = jnp.maximum(y_ref[...] * scale_ref[...] + shift_ref[...], 0.0)

    # rebuild each sample's reflect-padded layout in-register (XLU rolls + fixups);
    # valid data already sits at per-sample positions [left, left+L), so only the
    # K-1 reflect columns need fixing.
    hp = h
    for j in range(1, left + 1):          # left reflect cols take the value 2j cols ahead
        src = pltpu.roll(h, shift=(-2 * j) % TW, axis=1)
        hp = jnp.where(posp == (left - j), src, hp)
    for j in range(1, right + 1):         # right reflect cols take the value 2j cols behind
        src = pltpu.roll(h, shift=2 * j, axis=1)
        hp = jnp.where(posp == (left + L - 1 + j), src, hp)

    # conv2: one deep-contraction matmul on the in-register (K*C, TW) patch
    blocks = []
    for k in range(K):
        s = (left - k) % TW
        blocks.append(hp if s == 0 else pltpu.roll(hp, shift=s, axis=1))
    patch = jnp.concatenate(blocks, axis=0).astype(mxu_dtype)

    z = jnp.dot(w_ref[...], patch, preferred_element_type=jnp.float32) + b_ref[...]
    z_ref[...] = z

    valid = jnp.logical_and(posp >= left, posp < left + L)
    zm = jnp.where(valid, z, 0.0)
    sum_ref[...] = jnp.sum(zm, axis=1, keepdims=True)[None]
    sq_ref[...] = jnp.sum(zm * z, axis=1, keepdims=True)[None]


# ---------------------------------------------------------------------------
# pass 3: bn2 + residual add + relu (pure elementwise, lane-dense store)
# ---------------------------------------------------------------------------
def _bn_residual_relu_kernel(x_ref, z_ref, scale_ref, shift_ref, o_ref):
    o_ref[...] = jnp.maximum(
        z_ref[...] * scale_ref[...] + shift_ref[...] + x_ref[...], 0.0)


# ---------------------------------------------------------------------------
# wrapper
# ---------------------------------------------------------------------------
def residual_block(x, params, K, *, block_samples=None, mxu_dtype=jnp.float32):
    """ResidualBlock forward (training-mode BatchNorm batch statistics).

    stride is implicitly 1 (PyTorch requires stride == 1 with padding='same').
    `mxu_dtype=jnp.bfloat16` uses bf16 MXU operands with f32 accumulation
    (recommended on v6e/v7x); elementwise/BN math stays f32 on all chips.
    """
    N, C, L = x.shape
    left = (K - 1) // 2
    right = (K - 1) - left
    assert L > left and L > right, "reflect 'same' padding requires pad < length"

    Lp = L + K - 1                      # per-sample reflect-padded length
    P = _round_up(Lp, 128)              # lane-dense per-sample width
    if block_samples is None:
        block_samples = max(1, min(N, 1024 // P))   # target ~1024-lane tiles
    nb = int(block_samples)
    G = -(-N // nb)                     # grid steps
    TW = nb * P                         # lane-tile width (multiple of 128)
    Wtot = G * TW

    # fused channel-major slab: reflect pad -> zero pad to P -> batch folded into lanes
    xp = jnp.pad(x, ((0, 0), (0, 0), (left, right)), mode="reflect")       # (N, C, Lp)
    xp = jnp.pad(xp, ((0, 0), (0, 0), (0, P - Lp)))                        # (N, C, P)
    slab = jnp.transpose(xp, (1, 0, 2)).reshape(C, N * P)
    slab = jnp.pad(slab, ((0, 0), (0, Wtot - N * P)))                      # fake-sample pad

    # within-sample padded position; -1 on fake-sample pad columns (excluded everywhere)
    posp = jnp.tile(jnp.arange(P, dtype=jnp.int32), N)
    posp = jnp.pad(posp, (0, Wtot - N * P), constant_values=-1).reshape(1, Wtot)

    # weights flattened for the deep im2col contraction (tap-major columns)
    w1r = jnp.transpose(params["w1"], (0, 2, 1)).reshape(C, K * C).astype(mxu_dtype)
    w2r = jnp.transpose(params["w2"], (0, 2, 1)).reshape(C, K * C).astype(mxu_dtype)
    b1 = params["b1"].reshape(C, 1).astype(jnp.float32)
    b2 = params["b2"].reshape(C, 1).astype(jnp.float32)

    data_spec = pl.BlockSpec((C, TW), lambda i: (0, i))
    posp_spec = pl.BlockSpec((1, TW), lambda i: (0, i))
    vec_spec = pl.BlockSpec((C, 1), lambda i: (0, 0))       # constant block: no re-DMA
    w_spec = pl.BlockSpec((C, K * C), lambda i: (0, 0))
    stat_spec = pl.BlockSpec((1, C, 1), lambda i: (i, 0, 0))

    cparams = pltpu.CompilerParams(
        dimension_semantics=("parallel",),          # no cross-tile carries -> megacore OK
        vmem_limit_bytes=32 * 1024 * 1024,
    )

    slab_bytes = 4 * C * Wtot
    conv_cost = pl.CostEstimate(flops=2 * K * C * C * N * L, transcendentals=0,
                                bytes_accessed=2 * slab_bytes + 4 * Wtot)
    ew_cost = pl.CostEstimate(flops=3 * C * N * L, transcendentals=0,
                              bytes_accessed=3 * slab_bytes)

    slab_shape = jax.ShapeDtypeStruct((C, Wtot), jnp.float32)
    stat_shape = jax.ShapeDtypeStruct((G, C, 1), jnp.float32)

    count = float(N * L)

    def batch_affine(psum, psumsq, g, be):
        # tree-reduce tiny per-tile partials in f32, fold BN into per-channel scale/shift
        mean = jnp.sum(psum[:, :, 0], axis=0) / count
        ex2 = jnp.sum(psumsq[:, :, 0], axis=0) / count
        var = ex2 - mean * mean                              # biased var (training-mode BN)
        scale = g.reshape(-1) * jax.lax.rsqrt(var + EPS)
        shift = be.reshape(-1) - mean * scale
        return scale.reshape(C, 1), shift.reshape(C, 1)

    # ---- pass 1: conv1 + partial BN1 stats ----
    y_slab, s1, q1 = pl.pallas_call(
        partial(_conv_stats_kernel, K, left, L, mxu_dtype),
        grid=(G,),
        in_specs=[data_spec, posp_spec, w_spec, vec_spec],
        out_specs=[data_spec, stat_spec, stat_spec],
        out_shape=[slab_shape, stat_shape, stat_shape],
        compiler_params=cparams,
        cost_estimate=conv_cost,
    )(slab, posp, w1r, b1)

    scale1, shift1 = batch_affine(s1, q1, params["g1"], params["be1"])

    # ---- pass 2: bn1 + relu + reflect rebuild + conv2 + partial BN2 stats ----
    z_slab, s2, q2 = pl.pallas_call(
        partial(_bn_relu_conv_stats_kernel, K, left, L, mxu_dtype),
        grid=(G,),
        in_specs=[data_spec, posp_spec, vec_spec, vec_spec, w_spec, vec_spec],
        out_specs=[data_spec, stat_spec, stat_spec],
        out_shape=[slab_shape, stat_shape, stat_shape],
        compiler_params=cparams,
        cost_estimate=conv_cost,
    )(y_slab, posp, scale1, shift1, w2r, b2)

    scale2, shift2 = batch_affine(s2, q2, params["g2"], params["be2"])

    # ---- pass 3: bn2 + residual + relu ----
    out_slab = pl.pallas_call(
        _bn_residual_relu_kernel,
        grid=(G,),
        in_specs=[data_spec, data_spec, vec_spec, vec_spec],
        out_specs=data_spec,
        out_shape=slab_shape,
        compiler_params=cparams,
        cost_estimate=ew_cost,
    )(slab, z_slab, scale2, shift2)

    # un-fuse: (C, Wtot) -> (N, C, L); valid outputs sit at per-sample cols [left, left+L)
    out = out_slab[:, :N * P].reshape(C, N, P)[:, :, left:left + L]
    return jnp.transpose(out, (1, 0, 2))


# ---------------- pure-JAX reference (correctness check only) ----------------
def residual_block_ref(x, params, K):
    left = (K - 1) // 2
    right = (K - 1) - left

    def conv(inp, w, b):
        xp = jnp.pad(inp, ((0, 0), (0, 0), (left, right)), mode="reflect")
        out = jax.lax.conv_general_dilated(
            xp, w, window_strides=(1,), padding="VALID",
            dimension_numbers=("NCH", "OIH", "NCH"))
        return out + b.reshape(1, -1, 1)

    def bn(y, g, be):
        m = jnp.mean(y, axis=(0, 2), keepdims=True)
        v = jnp.mean((y - m) ** 2, axis=(0, 2), keepdims=True)
        return (y - m) * jax.lax.rsqrt(v + EPS) * g.reshape(1, -1, 1) + be.reshape(1, -1, 1)

    h = jax.nn.relu(bn(conv(x, params["w1"], params["b1"][:, 0]),
                       params["g1"][:, 0], params["be1"][:, 0]))
    z = bn(conv(h, params["w2"], params["b2"][:, 0]),
           params["g2"][:, 0], params["be2"][:, 0])
    return jax.nn.relu(z + x)


if __name__ == "__main__":
    N, C, L = 2, 8, 16
    K = 3  # padding='same' in PyTorch requires stride == 1

    key = jax.random.PRNGKey(0)
    kx, kw1, kb1, kw2, kb2, kg1, kbe1, kg2, kbe2 = jax.random.split(key, 9)

    x = jax.random.normal(kx, (N, C, L), dtype=jnp.float32)
    params = {
        "w1": 0.3 * jax.random.normal(kw1, (C, C, K), dtype=jnp.float32),
        "b1": 0.1 * jax.random.normal(kb1, (C, 1), dtype=jnp.float32),
        "g1": 1.0 + 0.1 * jax.random.normal(kg1, (C, 1), dtype=jnp.float32),
        "be1": 0.1 * jax.random.normal(kbe1, (C, 1), dtype=jnp.float32),
        "w2": 0.3 * jax.random.normal(kw2, (C, C, K), dtype=jnp.float32),
        "b2": 0.1 * jax.random.normal(kb2, (C, 1), dtype=jnp.float32),
        "g2": 1.0 + 0.1 * jax.random.normal(kg2, (C, 1), dtype=jnp.float32),
        "be2": 0.1 * jax.random.normal(kbe2, (C, 1), dtype=jnp.float32),
    }

    ref = jax.block_until_ready(residual_block_ref(x, params, K))

    # f32 MXU operands, block_samples=1 -> 2-step grid, exercises the tiled
    # pipeline + cross-tile BN partial-stat reduction.
    out_f32 = jax.block_until_ready(
        residual_block(x, params, K, block_samples=1, mxu_dtype=jnp.float32))
    np.testing.assert_allclose(np.asarray(out_f32), np.asarray(ref),
                               rtol=3e-4, atol=2e-5)

    # bf16 MXU operands (v6e/v7x fast path), default tile heuristic.
    out_bf16 = jax.block_until_ready(
        residual_block(x, params, K, mxu_dtype=jnp.bfloat16))
    np.testing.assert_allclose(np.asarray(out_bf16), np.asarray(ref),
                               rtol=1e-1, atol=1e-1)

    print("KERNEL_OK")
</pallas_src>

<mosaic_0001>
module attributes {stable_mosaic.version = 11 : i64} {
  func.func @_conv_stats_kernel(%arg0: i32, %arg1: memref<8x128xf32, #tpu.memory_space<vmem>>, %arg2: memref<1x128xi32, #tpu.memory_space<vmem>>, %arg3: memref<8x24xf32, #tpu.memory_space<vmem>>, %arg4: memref<8x1xf32, #tpu.memory_space<vmem>>, %arg5: memref<8x128xf32, #tpu.memory_space<vmem>>, %arg6: memref<1x8x1xf32, #tpu.memory_space<vmem>>, %arg7: memref<1x8x1xf32, #tpu.memory_space<vmem>>) attributes {dimension_semantics = [#tpu.dimension_semantics<parallel>], iteration_bounds = array<i64: 2>, scalar_prefetch = 0 : i64, scratch_operands = 0 : i64, tpu.core_type = #tpu.core_type<tc>, window_params = [{transform_indices = @transform_0, window_bounds = array<i64: 8, 128>}, {transform_indices = @transform_1, window_bounds = array<i64: 1, 128>}, {pipeline_mode = #tpu.pipeline_mode<synchronous>, transform_indices = @transform_2, window_bounds = array<i64: 8, 24>}, {pipeline_mode = #tpu.pipeline_mode<synchronous>, transform_indices = @transform_3, window_bounds = array<i64: 8, 1>}, {transform_indices = @transform_4, window_bounds = array<i64: 8, 128>}, {transform_indices = @transform_5, window_bounds = array<i64: 1, 8, 1>}, {transform_indices = @transform_6, window_bounds = array<i64: 1, 8, 1>}]} {
    %c0 = arith.constant 0 : index
    %c0_0 = arith.constant 0 : index
    %0 = vector.load %arg1[%c0, %c0_0] : memref<8x128xf32, #tpu.memory_space<vmem>>, vector<8x128xf32>
    %c0_1 = arith.constant 0 : index
    %c0_2 = arith.constant 0 : index
    %1 = vector.load %arg2[%c0_1, %c0_2] : memref<1x128xi32, #tpu.memory_space<vmem>>, vector<1x128xi32>
    %c1_i32 = arith.constant 1 : i32
    %2 = tpu.dynamic_rotate %0 by %c1_i32 dim 1 : vector<8x128xf32>, i32 -> vector<8x128xf32>
    %c127_i32 = arith.constant 127 : i32
    %3 = tpu.dynamic_rotate %0 by %c127_i32 dim 1 : vector<8x128xf32>, i32 -> vector<8x128xf32>
    %4 = tpu.concatenate %2, %0, %3 in 0 : vector<8x128xf32>, vector<8x128xf32>, vector<8x128xf32> -> vector<24x128xf32>
    %c0_3 = arith.constant 0 : index
    %c0_4 = arith.constant 0 : index
    %5 = vector.load %arg3[%c0_3, %c0_4] : memref<8x24xf32, #tpu.memory_space<vmem>>, vector<8x24xf32>
    %cst = arith.constant dense<0.000000e+00> : vector<8x128xf32>
    %6 = tpu.matmul %5, %4, %cst {dimension_numbers = #tpu.dot_dimension_numbers<[1], [0], [0], [1], [0, 0, 1, 1], [], []>} : vector<8x24xf32>, vector<24x128xf32>, vector<8x128xf32> -> vector<8x128xf32>
    %c0_5 = arith.constant 0 : index
    %c0_6 = arith.constant 0 : index
    %7 = vector.load %arg4[%c0_5, %c0_6] : memref<8x1xf32, #tpu.memory_space<vmem>>, vector<8x1xf32>
    %8 = vector.broadcast %7 : vector<8x1xf32> to vector<8x128xf32>
    %9 = arith.addf %6, %8 : vector<8x128xf32>
    %c0_7 = arith.constant 0 : index
    %c0_8 = arith.constant 0 : index
    %10 = vector.load %arg5[%c0_7, %c0_8] : memref<8x128xf32, #tpu.memory_space<vmem>>, vector<8x128xf32>
    tpu.vector_store %arg5[%c0_7, %c0_8], %9 {strides = array<i32>} : memref<8x128xf32, #tpu.memory_space<vmem>>, vector<8x128xf32>,
    %c1_i32_9 = arith.constant 1 : i32
    %11 = vector.broadcast %c1_i32_9 : i32 to vector<1x128xi32>
    %12 = arith.cmpi sge, %1, %11 : vector<1x128xi32>
    %c17_i32 = arith.constant 17 : i32
    %13 = vector.broadcast %c17_i32 : i32 to vector<1x128xi32>
    %14 = arith.cmpi slt, %1, %13 : vector<1x128xi32>
    %15 = arith.andi %12, %14 : vector<1x128xi1>
    %cst_10 = arith.constant 0.000000e+00 : f32
    %16 = vector.shape_cast %15 : vector<1x128xi1> to vector<1x128xi1>
    %17 = vector.broadcast %16 : vector<1x128xi1> to vector<8x128xi1>
    %18 = vector.broadcast %cst_10 : f32 to vector<8x128xf32>
    %19 = arith.select %17, %9, %18 : vector<8x128xi1>, vector<8x128xf32>
    %cst_11 = arith.constant dense<0.000000e+00> : vector<8xf32>
    %20 = vector.multi_reduction <add>, %19, %cst_11 [1] : vector<8x128xf32> to vector<8xf32>
    %21 = vector.shape_cast %20 : vector<8xf32> to vector<8x1xf32>
    %22 = vector.shape_cast %21 : vector<8x1xf32> to vector<1x8x1xf32>
    %c0_12 = arith.constant 0 : index
    %c0_13 = arith.constant 0 : index
    %c0_14 = arith.constant 0 : index
    %23 = vector.load %arg6[%c0_12, %c0_13, %c0_14] : memref<1x8x1xf32, #tpu.memory_space<vmem>>, vector<1x8x1xf32>
    tpu.vector_store %arg6[%c0_12, %c0_13, %c0_14], %22 {strides = array<i32>} : memref<1x8x1xf32, #tpu.memory_space<vmem>>, vector<1x8x1xf32>,
    %24 = arith.mulf %19, %9 : vector<8x128xf32>
    %cst_15 = arith.constant dense<0.000000e+00> : vector<8xf32>
    %25 = vector.multi_reduction <add>, %24, %cst_15 [1] : vector<8x128xf32> to vector<8xf32>
    %26 = vector.shape_cast %25 : vector<8xf32> to vector<8x1xf32>
    %27 = vector.shape_cast %26 : vector<8x1xf32> to vector<1x8x1xf32>
    %c0_16 = arith.constant 0 : index
    %c0_17 = arith.constant 0 : index
    %c0_18 = arith.constant 0 : index
    %28 = vector.load %arg7[%c0_16, %c0_17, %c0_18] : memref<1x8x1xf32, #tpu.memory_space<vmem>>, vector<1x8x1xf32>
    tpu.vector_store %arg7[%c0_16, %c0_17, %c0_18], %27 {strides = array<i32>} : memref<1x8x1xf32, #tpu.memory_space<vmem>>, vector<1x8x1xf32>,
    return
  }
  func.func @transform_0(%arg0: i32) -> (i32, i32) {
    %c0_i32 = arith.constant 0 : i32
    %c0_i32_0 = arith.constant 0 : i32
    return %c0_i32, %arg0 : i32, i32
  }
  func.func @transform_1(%arg0: i32) -> (i32, i32) {
    %c0_i32 = arith.constant 0 : i32
    %c0_i32_0 = arith.constant 0 : i32
    return %c0_i32, %arg0 : i32, i32
  }
  func.func @transform_2(%arg0: i32) -> (i32, i32) {
    %c0_i32 = arith.constant 0 : i32
    %c0_i32_0 = arith.constant 0 : i32
    %c0_i32_1 = arith.constant 0 : i32
    return %c0_i32, %c0_i32_0 : i32, i32
  }
  func.func @transform_3(%arg0: i32) -> (i32, i32) {
    %c0_i32 = arith.constant 0 : i32
    %c0_i32_0 = arith.constant 0 : i32
    %c0_i32_1 = arith.constant 0 : i32
    return %c0_i32, %c0_i32_0 : i32, i32
  }
  func.func @transform_4(%arg0: i32) -> (i32, i32) {
    %c0_i32 = arith.constant 0 : i32
    %c0_i32_0 = arith.constant 0 : i32
    return %c0_i32, %arg0 : i32, i32
  }
  func.func @transform_5(%arg0: i32) -> (i32, i32, i32) {
    %c0_i32 = arith.constant 0 : i32
    %c0_i32_0 = arith.constant 0 : i32
    %c0_i32_1 = arith.constant 0 : i32
    return %arg0, %c0_i32, %c0_i32_0 : i32, i32, i32
  }
  func.func @transform_6(%arg0: i32) -> (i32, i32, i32) {
    %c0_i32 = arith.constant 0 : i32
    %c0_i32_0 = arith.constant 0 : i32
    %c0_i32_1 = arith.constant 0 : i32
    return %arg0, %c0_i32, %c0_i32_0 : i32, i32, i32
  }
}

</mosaic_0001>

<bundles_post_ra>
// kernel: tpu_custom_call.1
= control target key start
LH: loop header
LB: loop body
LE: loop exit
PB: predicated region body
PF: predicated region fallthrough
CT: control target
= control target key end

     0   :  { %12 = vsyncpa [#allocation3], 0  ;;  %s868_s0 = inlined_call_operand.hbm [shape: f32[8,256], index: 0, kind: input, shape index: {}]   ;;  %s869_s1 = inlined_call_operand.vmem [shape: s32[1,256], index: 1, kind: input, shape index: {}]   ;;  %s870_s2 = inlined_call_operand.vmem [shape: f32[8,24], index: 2, kind: input, shape index: {}]   ;;  %s871_s3 = inlined_call_operand.vmem [shape: f32[8,1], index: 3, kind: input, shape index: {}]   ;;  %s872_s4 = inlined_call_operand.hbm [shape: f32[8,256], index: 4, kind: output, shape index: {0}]   ;;  %s873_s5 = inlined_call_operand.vmem [shape: f32[2,8,1], index: 5, kind: output, shape index: {1}]   ;;  %s874_s6 = inlined_call_operand.vmem [shape: f32[2,8,1], index: 6, kind: output, shape index: {2}]  }
   0x1   :  { %14 = vsyncpa [#allocation3 + $0x1], 0 }
   0x2   :  { %15 = vsyncpa [#allocation4], 0 }
   0x3   :  { %17 = vsyncpa [#allocation4 + $0x1], 0  ;;  %s716_s21 = smov 0   ;;  %s718_s22 = smov 0  }
   0x4   :  { %s720_s23 = smov 0   ;;  %s722_s24 = smov 0  }
   0x5 LB: > { %s737_s25 = sadd.s32 4294967295, %s676_s24   ;;  %s514_s26 = sadd.s32 4294967294, %s676_s24   ;;  %s676_s24 = sphi %s722_s24, %s884_s24   ;;  %s672_s23 = sphi %s720_s23, %s883_s23   ;;  %s668_s22 = sphi %s718_s22, %s882_s22   ;;  %s664_s21 = sphi %s716_s21, %s881_s21  }
   0x6   : > { %s741_s27 = sadd.s32 1, %s676_s24   ;;  %s30_s28 = sadd.s32 1, %s672_s23 }
   0x7   : > { %s27_s29 = ssub.s32 %s676_s24, %s741_s27  ;;  %p37_p0 = scmp.ne.s32.totalorder %s672_s23, %s668_s22 }
   0x8   : > { %p28_p1 = scmp.eq.s32.totalorder %s27_s29, 0  ;;  %p38_p2 = scmp.eq.s32.totalorder %s676_s24, 0 }
   0x9   : > { %p43_p3 = scmp.ne.s32.totalorder %s668_s22, %s664_s21  ;;  %p44_p4 = scmp.eq.s32.totalorder %s737_s25, 0 }
   0xa   : > { %s753_s30 = scalar_select %p28_p1, %s672_s23, %s30_s28  }
   0xb   : > { %p755_p5 = por %p38_p2, %p37_p0  ;;  %p759_p6 = por %p44_p4, %p43_p3 }
   0xc   : > { %p135_p7 = scmp.eq.s32.totalorder %s737_s25, 1  ;;  %p141_p8 = scmp.eq.s32.totalorder %s514_s26, 1 }
   0xd   : > { %p541_p10 = scmp.lt.s32.totalorder %s676_s24, 2  ;;  %s219_s11 = sand.u32 1, %s672_s23  }
   0xe   : > { %p766_p11 = por %p135_p7, %p37_p0  ;;  %p770_p12 = por %p141_p8, %p43_p3 }
   0xf   : > { %s518_s12 = sshll.u32 %s676_s24, 3  ;;  %s517_s13 = sshll.u32 %s219_s11, 3 }
  0x10   : > { %s227_s16 = scalar_lea.hbm %s868_s0, %s518_s12  ;;  %s223_s18 = scalar_lea.vmem [#allocation2], %s517_s13 }
  0x11   : > { %s229_s17 = sshll.u32 %s227_s16, 4  ;;  %s231_s19 = sshll.u32 %s223_s18, 4  ;;  %s230_s17 = int_to_ptr.hbm [resolvable:$true] %s229_s17  ;;  %s232_s19 = int_to_ptr.vmem [resolvable:$true] %s231_s19 }
  0x12   : > { %p781_p13 = pnand %p541_p10, %p755_p5  ;;  %p519_p0 = scmp.ge.s32.totalorder %s676_s24, 1 }
  0x13   : > { %p242_p1 = scmp.lt.s32.totalorder %s676_s24, 3  ;;  %s220_s26 = scalar_lea.sflag [#allocation3], %s219_s11 }
  0x14   : > { %s580_s28 = sshra.s32 %s230_s17, 4  ;;  %p584_p3 = pneg %p781_p13  ;;  %s581_s28 = int_to_ptr.hbm [resolvable:$true] %s580_s28 }
  0x15   : > { %s582_s29 = scalar_lea.hbm %s581_s28, 8  ;;  %s587_s7 = scalar_lea.hbm %s868_s0, 16 }
  0x16   : > { %p583_p2 = scmp.ne.s32.totalorder %s581_s28, %s582_s29  ;;  %p588_p5 = scmp.lt.s32.totalorder %s581_s28, %s868_s0 }
  0x17   : > { %p589_p8 = scmp.lt.s32.totalorder %s587_s7, %s582_s29 }
  0x18   : > { %p585_p4 = pnand %p584_p3, %p583_p2 }
  0x19   : > { %p590_p10 = por %p589_p8, %p588_p5 }
  0x1a   : > { %p586_p7 = pneg %p585_p4 }
  0x1c   : > { %p591_p9 = pnand %p590_p10, %p586_p7 }
  0x1e   : > { %594 = shalt.err (!%p591_p9)
}
  0x1f   : > { %536 = dma.hbm_to_vmem [thread:$0]  (!%p781_p13), %s230_s17, 128, %s232_s19, %s220_s26  }
  0x20   : > { %p243_p2 = pnand %p519_p0, %p242_p1 }
  0x21   : > { %s802_s11 = sand.u32 (!%p243_p2), 1, %s668_s22  }
  0x22   : > { %246 = sbr.rel (%p243_p2) target bundleno = 413 (0x19d), region = 36  ;;  %s520_s16 = sshll.u32 (!%p243_p2), %s802_s11, 3 }
  0x23   : > { %s249_s18 = scalar_lea.sflag (!%p243_p2), [#allocation3], %s802_s11  ;;  %s252_s28 = scalar_lea.vmem (!%p243_p2), [#allocation2], %s520_s16 }
  0x27   : > { %655 = dma.done.wait (%p759_p6), %s249_s18, 128  }
  0x28   : > { %657 = vsyncadd (%p759_p6), %s249_s18, 4294967168  ;;  %v304_v0 = vld [vmem:[%s252_s28] sm:$0xff]  ;;  %s678_s17 = smov 127   ;;  %s679_s19 = smov 1   ;;  %v680_v2 = vmov 0   ;;  %vm317_vm0 = vcmask 195584  }
  0x29   : > { %308 = vrot.lane.b32.xlu0 %v304_v0, %s678_s17  ;;  %v311_v1 = vld [vmem:[%s871_s3] sm:$0xff]  ;;  %578 = vset.pattern.permute.xlu1 %v680_v2  ;;  %p293_p6 = scmp.lt.s32.totalorder %s737_s25, 1  ;;  %s526_s15 = sshll.u32 %s737_s25, 3 }
  0x2a   : > { %579 = vset.pattern.permute.xlu0 %v680_v2  ;;  %314 = vperm.xlu1 %578, %v311_v1   ;;  %v310_v4 = vld [vmem:[%s870_s2] sm:$0xff]  ;;  %s376_s17 = scalar_lea.hbm %s872_s4, %s526_s15  ;;  %s630_s7 = scalar_lea.hbm %s872_s4, 16 }
  0x2b   : > { %s820_s12 = scalar_select %p293_p6, %s737_s25, 1 }
  0x2c   : > { %s380_s26 = sshll.u32 %s376_s17, 4  ;;  %s358_s25 = scalar_lea.sflag [#allocation4], %s802_s11  ;;  %s381_s26 = int_to_ptr.hbm [resolvable:$true] %s380_s26 }
  0x2d   : > { %s295_s14 = scalar_lea.vmem %s869_s1, %s820_s12  ;;  %s624_s8 = sshra.s32 %s381_s26, 4  ;;  %s625_s8 = int_to_ptr.hbm [resolvable:$true] %s624_s8 }
  0x2e   : > { %v305_v6 = vld [vmem:[%s295_s14] sm:$0x1]  ;;  %s626_s29 = scalar_lea.hbm %s625_s8, 8  ;;  %p631_p1 = scmp.lt.s32.totalorder %s625_s8, %s872_s4 }
  0x2f   : > { %vm342_vm1 = vcmp.ge.s32.totalorder %v305_v6, 1  ;;  %vm343_vm2 = vcmp.lt.s32.totalorder %v305_v6, 17  ;;  %p627_p9 = scmp.ne.s32.totalorder %s625_s8, %s626_s29  ;;  %p632_p3 = scmp.lt.s32.totalorder %s630_s7, %s626_s29 }
  0x30   : > { %vm344_vm3 = vmand %vm342_vm1, %vm343_vm2 }
  0x31   : > { %306 = vrot.lane.b32.xlu0 %v304_v0, %s679_s19  ;;  %v345_v7 = vsel %vm344_vm3, 1, %v680_v2  ;;  %s280_s19 = scalar_lea.vmem [#allocation5], %s520_s16  ;;  %p628_p13 = pnand %p627_p9, %p766_p11 }
  0x32   : > { %v346_v8 = vperm.slane %v345_v7, 0  ;;  %s378_s20 = sshll.u32 %s280_s19, 4  ;;  %p633_p4 = por %p632_p3, %p631_p1  ;;  %s379_s20 = int_to_ptr.vmem [resolvable:$true] %s378_s20 }
  0x33   : > { %p629_p0 = pneg %p628_p13 }
  0x34   : > { %vm347_vm4 = vcmp.eq.s32.totalorder %v346_v8, 1 }
  0x35   : > { %p634_p7 = pnand %p633_p4, %p629_p0 }
  0x9b   : > { %v309_v3 = vpop.permute.xlu0 %308 }
  0x9c   : > { %334 = vmatpush.msra.mxu0 %v309_v3  ;;  %v315_v9 = vpop.permute.xlu1 %314 }
  0x9e   : > { %335 = vmatpush.msra.mxu0 %v304_v0 }
  0xa3   : > { %v307_v5 = vpop.permute.xlu0 %306 }
  0xa4   : > { %336 = vmatpush.msra.mxu0 %v307_v5 }
  0xa5   : > { %524 = vmatmul.msk.f32.vlgmr.msra.gmra.mxu0 %vm317_vm0, %v310_v4 }
 0x122   : > { %v338_v10 = vpop.f32.mrf.mxu0 }
 0x123   : > { %v339_v11 = vadd.f32 %v338_v10, %v315_v9 }
 0x125   : > { %341 = vst [vmem:[%s280_s19] sm:$0xff] %v339_v11  ;;  %v348_v12 = vsel %vm347_vm4, %v339_v11, 0.0 }
 0x126   : > { %349 = vadd.xlane.f32.xlu1 %v348_v12  ;;  %v353_v13 = vmul.f32 %v348_v12, %v339_v11 }
 0x127   : > { %637 = shalt.err (!%p634_p7)
}
 0x128   : > { %531 = dma.vmem_to_hbm [thread:$0]  (%p766_p11), %s379_s20, 128, %s381_s26, %s358_s25   ;;  %354 = vadd.xlane.f32.xlu2 %v353_v13  ;;  %vm351_vm5 = vcmask 7168  }
 0x129   : > { %s522_s11 = sshll.u32 %s820_s12, 3 }
 0x12a   : > { %s299_s17 = scalar_lea.vmem %s873_s5, %s522_s11  ;;  %s303_s8 = scalar_lea.vmem %s874_s6, %s522_s11 }
 0x199   : > { %v350_v14 = vpop.xlane.xlu1 %349 }
 0x19a   : > { %352 = vst.msk [vmem:[%s299_s17] sm:$0xff] %vm351_vm5, %v350_v14 }
 0x19b   : > { %v355_v15 = vpop.xlane.xlu2 %354 }
 0x19c   : > { %356 = vst.msk [vmem:[%s303_s8] sm:$0xff] %vm351_vm5, %v355_v15 }
 0x19d PF: > { %s398_s9 = sand.u32 1, %s664_s21   ;;  %p880_p11 = scmp.ge.s32.totalorder %s676_s24, 2 }
 0x19e   : > { %s399_s12 = scalar_lea.sflag [#allocation4], %s398_s9 }
 0x19f   : > { %p538_p5 = pnand %p880_p11, %p770_p12 }
 0x1a1   : > { %p539_p8 = pneg %p538_p5 }
 0x1a3   : > { %659 = dma.done.wait (%p539_p8), %s399_s12, 128  }
 0x1a4   : > { %661 = vsyncadd (%p539_p8), %s399_s12, 4294967168  ;;  %p20_p10 = scmp.ge.s32.totalorder %s741_s27, 4   ;;  %s881_s21 = smov %s668_s22 }
 0x1a5   : > { %s882_s22 = smov %s672_s23  ;;  %s883_s23 = smov %s753_s30 }
 0x1a6   : > { %s884_s24 = smov %s741_s27  ;;  %22 = sbr.rel (!%p20_p10) target bundleno = 5 (0x5), region = 108 }
 0x1ab   :  { %419 = vsyncpa [#allocation3], 1 }
 0x1ac   :  { %421 = vsyncpa [#allocation3 + $0x1], 1 }
 0x1ad   :  { %422 = vsyncpa [#allocation4], 1 }
 0x1ae   :  { %424 = vsyncpa [#allocation4 + $0x1], 1 }

</bundles_post_ra>
